<compile_context>
chip_gen: v7x
topology: tpu7x:2x2x1
jax: 0.10.0
libtpu: 0.0.40
codegen_flags: <defaults>
</compile_context>

<pallas_src>
import functools

import jax
import jax.numpy as jnp
from jax.experimental import pallas as pl
from jax.experimental.pallas import tpu as pltpu

_LANE = 128  # lane width (last-dim alignment)


def _round_up(x, m):
    return ((x + m - 1) // m) * m


def _sublane_rows(dtype):
    # 32-bit dtypes: 8 rows / vreg; sub-32-bit dtypes pack along sublanes.
    return max(8, 32 // jnp.dtype(dtype).itemsize)


def _tpu_vmem_and_cores():
    """Trace-time hardware query with safe fallbacks."""
    vmem_cap = 128 << 20
    try:
        cap = getattr(pltpu.get_tpu_info(), "vmem_capacity_bytes", None)
        if cap:
            vmem_cap = int(cap)
    except Exception:
        pass
    two_cores = False
    try:
        kind = jax.devices()[0].device_kind.lower()
        two_cores = "v7" in kind
    except Exception:
        pass
    if two_cores:
        vmem_cap = min(vmem_cap, 64 << 20)  # 64 MiB per TensorCore on v7x
    return vmem_cap, two_cores


def _spec(shape, index_map, buffers=None):
    """BlockSpec with optional pipeline depth; degrades gracefully."""
    if buffers is not None and hasattr(pl, "Buffered"):
        try:
            return pl.BlockSpec(shape, index_map,
                                pipeline_mode=pl.Buffered(buffers))
        except TypeError:
            pass
    return pl.BlockSpec(shape, index_map)


def _resmlp_kernel(x_ref, wcat_ref, b1_ref, w2_ref, bo_ref, o_ref, *, hidden_p):
    x = x_ref[...]                                           # (BT, Cin_p)
    # One fused MXU pass over x: Wcat = [W1 | Ws] along the output dim.
    cat = jnp.dot(x, wcat_ref[...], preferred_element_type=jnp.float32)
    h = jnp.maximum(cat[:, :hidden_p] + b1_ref[...], 0.0)   # hidden (f32)
    sc = cat[:, hidden_p:]                                   # shortcut (f32)
    main = jnp.dot(h.astype(w2_ref.dtype), w2_ref[...],
                   preferred_element_type=jnp.float32)
    # bo = b2 + bs, pre-summed in pack_params.
    o_ref[...] = (main + sc + bo_ref[...]).astype(o_ref.dtype)


def pack_params(w1, b1, w2, b2, ws, bs, dtype=None):
    """One-time parameter packing/padding (hoisted out of the forward pass).

    Weights stored as (in_features, out_features) so the kernel does x @ W.
    Returns (packed_params, (Cin, H, Cout)).
    """
    if dtype is None:
        dtype = w1.dtype
    Cin, H = w1.shape
    Cout = w2.shape[1]
    Cin_p = _round_up(Cin, _LANE)
    H_p = _round_up(H, _LANE)
    Cout_p = _round_up(Cout, _LANE)

    wcat = jnp.zeros((Cin_p, H_p + Cout_p), dtype)
    wcat = wcat.at[:Cin, :H].set(w1.astype(dtype))
    wcat = wcat.at[:Cin, H_p:H_p + Cout].set(ws.astype(dtype))
    b1_p = jnp.zeros((1, H_p), dtype).at[:, :H].set(
        b1.reshape(1, H).astype(dtype))
    w2_p = jnp.zeros((H_p, Cout_p), dtype).at[:H, :Cout].set(w2.astype(dtype))
    bo = (b2.reshape(1, Cout).astype(jnp.float32) +
          bs.reshape(1, Cout).astype(jnp.float32)).astype(dtype)
    bo_p = jnp.zeros((1, Cout_p), dtype).at[:, :Cout].set(bo)
    return (wcat, b1_p, w2_p, bo_p), (Cin, H, Cout)


def resmlp_forward(x, packed, dims):
    """Forward pass: only x is padded per call; weights come pre-packed."""
    wcat, b1_p, w2_p, bo_p = packed
    Cin, H, Cout = dims
    B = x.shape[0]
    dtype = x.dtype
    itemsize = jnp.dtype(dtype).itemsize

    Cin_p = wcat.shape[0]
    H_p = b1_p.shape[1]
    Cout_p = w2_p.shape[1]

    vmem_cap, two_cores = _tpu_vmem_and_cores()
    sub = _sublane_rows(dtype)

    # --- Batch tile selection (generation-aware). ---
    big_channels = (H_p + Cout_p) > 1024 or Cin_p > 1024
    if vmem_cap <= (64 << 20):          # v7x-class: 64 MiB per TC, 2 TCs
        bt_max = 256 if big_channels else 512
    else:                               # v5e / v6e: 128 MiB, single TC
        bt_max = 512 if big_channels else 1024
    BT = min(bt_max, _round_up(B, sub))
    if two_cores and B > sub:
        # >=2 grid tiles so "parallel" semantics actually use both TensorCores.
        BT = min(BT, _round_up(pl.cdiv(B, 2), sub))
    BT = max(BT, sub)
    B_pad = _round_up(B, BT)
    grid = (B_pad // BT,)

    # --- Pad only x per call. ---
    if B_pad != B or Cin_p != Cin:
        x_p = jnp.zeros((B_pad, Cin_p), dtype).at[:B, :Cin].set(x)
    else:
        x_p = x

    # --- VMEM budget (weights single-buffered, x/out double-buffered,
    #     f32 intermediates cat + h + main all live). ---
    weight_bytes = itemsize * (wcat.size + w2_p.size + b1_p.size + bo_p.size)
    stream_bytes = itemsize * BT * (2 * Cin_p + 2 * Cout_p)
    scratch_bytes = 4 * BT * (2 * H_p + 2 * Cout_p)
    vmem_bytes = weight_bytes + stream_bytes + scratch_bytes + (2 << 20)
    if vmem_cap <= (64 << 20):
        vmem_ceiling = vmem_cap - (8 << 20)            # v7x headroom
    else:
        vmem_ceiling = min(vmem_cap - (16 << 20), 100 << 20)
    vmem_bytes = int(max(min(vmem_bytes, vmem_ceiling), 4 << 20))

    flops = 2 * B_pad * (Cin_p * (H_p + Cout_p) + H_p * Cout_p)
    bytes_accessed = itemsize * (B_pad * Cin_p + wcat.size + b1_p.size +
                                 w2_p.size + bo_p.size + B_pad * Cout_p)
    cost = pl.CostEstimate(flops=flops, transcendentals=0,
                           bytes_accessed=bytes_accessed)

    # TODO(synk): add a K/N-tiled grid fallback for channel sizes whose
    # weight-resident working set exceeds the v7x 64 MiB VMEM budget.
    kernel = functools.partial(_resmlp_kernel, hidden_p=H_p)
    out_p = pl.pallas_call(
        kernel,
        out_shape=jax.ShapeDtypeStruct((B_pad, Cout_p), dtype),
        grid=grid,
        in_specs=[
            _spec((BT, Cin_p), lambda i: (i, 0)),                       # x streams
            _spec((Cin_p, H_p + Cout_p), lambda i: (0, 0), buffers=1),  # Wcat resident
            _spec((1, H_p), lambda i: (0, 0), buffers=1),               # b1 resident
            _spec((H_p, Cout_p), lambda i: (0, 0), buffers=1),          # W2 resident
            _spec((1, Cout_p), lambda i: (0, 0), buffers=1),            # b2+bs resident
        ],
        out_specs=pl.BlockSpec((BT, Cout_p), lambda i: (i, 0)),
        compiler_params=pltpu.CompilerParams(
            dimension_semantics=("parallel",),
            vmem_limit_bytes=vmem_bytes),
        cost_estimate=cost,
    )(x_p, wcat, b1_p, w2_p, bo_p)

    return out_p[:B, :Cout]


def init_params(key, in_channels, hidden_channels, out_channels,
                dtype=jnp.float32):
    """Deterministic PyTorch-Linear-style init (uniform in +-1/sqrt(fan_in))."""
    ks = jax.random.split(key, 6)

    def lin(kw, kb, fan_in, fan_out):
        bound = 1.0 / jnp.sqrt(fan_in)
        w = jax.random.uniform(kw, (fan_in, fan_out), dtype, -bound, bound)
        b = jax.random.uniform(kb, (1, fan_out), dtype, -bound, bound)
        return w, b

    w1, b1 = lin(ks[0], ks[1], in_channels, hidden_channels)
    w2, b2 = lin(ks[2], ks[3], hidden_channels, out_channels)
    # in_channels != out_channels here -> shortcut is a Linear.
    ws, bs = lin(ks[4], ks[5], in_channels, out_channels)
    return w1, b1, w2, b2, ws, bs


if __name__ == "__main__":
    B, Cin, Hid, Cout = 8, 32, 64, 48
    key = jax.random.PRNGKey(0)
    kx, kp = jax.random.split(key)
    x = jax.random.normal(kx, (B, Cin), jnp.float32)
    w1, b1, w2, b2, ws, bs = init_params(kp, Cin, Hid, Cout)

    # One-time parameter prep (hoisted out of the forward pass).
    packed, dims = pack_params(w1, b1, w2, b2, ws, bs)

    fwd = jax.jit(functools.partial(resmlp_forward, dims=dims))
    out = jax.block_until_ready(fwd(x, packed))

    # Pure-JAX reference check of the exact PyTorch forward semantics.
    h_ref = jnp.maximum(x @ w1 + b1, 0.0)
    ref = (h_ref @ w2 + b2) + (x @ ws + bs)
    assert out.shape == (B, Cout)
    assert jnp.allclose(out, ref, atol=1e-5, rtol=1e-5)

    print("KERNEL_OK")
</pallas_src>

<mosaic_0001>
module attributes {stable_mosaic.version = 11 : i64} {
  func.func @_resmlp_kernel(%arg0: i32, %arg1: memref<8x128xf32, #tpu.memory_space<vmem>>, %arg2: memref<128x256xf32, #tpu.memory_space<vmem>>, %arg3: memref<1x128xf32, #tpu.memory_space<vmem>>, %arg4: memref<128x128xf32, #tpu.memory_space<vmem>>, %arg5: memref<1x128xf32, #tpu.memory_space<vmem>>, %arg6: memref<8x128xf32, #tpu.memory_space<vmem>>) attributes {dimension_semantics = [#tpu.dimension_semantics<parallel>], iteration_bounds = array<i64: 1>, scalar_prefetch = 0 : i64, scratch_operands = 0 : i64, tpu.core_type = #tpu.core_type<tc>, window_params = [{transform_indices = @transform_0, window_bounds = array<i64: 8, 128>}, {pipeline_mode = #tpu.pipeline_mode<synchronous>, transform_indices = @transform_1, window_bounds = array<i64: 128, 256>}, {pipeline_mode = #tpu.pipeline_mode<synchronous>, transform_indices = @transform_2, window_bounds = array<i64: 1, 128>}, {pipeline_mode = #tpu.pipeline_mode<synchronous>, transform_indices = @transform_3, window_bounds = array<i64: 128, 128>}, {pipeline_mode = #tpu.pipeline_mode<synchronous>, transform_indices = @transform_4, window_bounds = array<i64: 1, 128>}, {transform_indices = @transform_5, window_bounds = array<i64: 8, 128>}]} {
    %c0 = arith.constant 0 : index
    %c0_0 = arith.constant 0 : index
    %0 = vector.load %arg1[%c0, %c0_0] : memref<8x128xf32, #tpu.memory_space<vmem>>, vector<8x128xf32>
    %c0_1 = arith.constant 0 : index
    %c0_2 = arith.constant 0 : index
    %1 = vector.load %arg2[%c0_1, %c0_2] : memref<128x256xf32, #tpu.memory_space<vmem>>, vector<128x256xf32>
    %cst = arith.constant dense<0.000000e+00> : vector<8x256xf32>
    %2 = tpu.matmul %0, %1, %cst {dimension_numbers = #tpu.dot_dimension_numbers<[1], [0], [0], [1], [0, 0, 1, 1], [], []>} : vector<8x128xf32>, vector<128x256xf32>, vector<8x256xf32> -> vector<8x256xf32>
    %3 = vector.extract_strided_slice %2 {offsets = [0, 0], sizes = [8, 128], strides = [1, 1]} : vector<8x256xf32> to vector<8x128xf32>
    %c0_3 = arith.constant 0 : index
    %c0_4 = arith.constant 0 : index
    %4 = vector.load %arg3[%c0_3, %c0_4] : memref<1x128xf32, #tpu.memory_space<vmem>>, vector<1x128xf32>
    %5 = vector.broadcast %4 : vector<1x128xf32> to vector<8x128xf32>
    %6 = arith.addf %3, %5 : vector<8x128xf32>
    %cst_5 = arith.constant 0.000000e+00 : f32
    %7 = vector.broadcast %cst_5 : f32 to vector<8x128xf32>
    %8 = arith.maximumf %6, %7 : vector<8x128xf32>
    %9 = vector.extract_strided_slice %2 {offsets = [0, 128], sizes = [8, 128], strides = [1, 1]} : vector<8x256xf32> to vector<8x128xf32>
    %c0_6 = arith.constant 0 : index
    %c0_7 = arith.constant 0 : index
    %10 = vector.load %arg4[%c0_6, %c0_7] : memref<128x128xf32, #tpu.memory_space<vmem>>, vector<128x128xf32>
    %cst_8 = arith.constant dense<0.000000e+00> : vector<8x128xf32>
    %11 = tpu.matmul %8, %10, %cst_8 {dimension_numbers = #tpu.dot_dimension_numbers<[1], [0], [0], [1], [0, 0, 1, 1], [], []>} : vector<8x128xf32>, vector<128x128xf32>, vector<8x128xf32> -> vector<8x128xf32>
    %12 = arith.addf %11, %9 : vector<8x128xf32>
    %c0_9 = arith.constant 0 : index
    %c0_10 = arith.constant 0 : index
    %13 = vector.load %arg5[%c0_9, %c0_10] : memref<1x128xf32, #tpu.memory_space<vmem>>, vector<1x128xf32>
    %14 = vector.broadcast %13 : vector<1x128xf32> to vector<8x128xf32>
    %15 = arith.addf %12, %14 : vector<8x128xf32>
    %c0_11 = arith.constant 0 : index
    %c0_12 = arith.constant 0 : index
    %16 = vector.load %arg6[%c0_11, %c0_12] : memref<8x128xf32, #tpu.memory_space<vmem>>, vector<8x128xf32>
    tpu.vector_store %arg6[%c0_11, %c0_12], %15 {strides = array<i32>} : memref<8x128xf32, #tpu.memory_space<vmem>>, vector<8x128xf32>,
    return
  }
  func.func @transform_0(%arg0: i32) -> (i32, i32) {
    %c0_i32 = arith.constant 0 : i32
    %c0_i32_0 = arith.constant 0 : i32
    return %arg0, %c0_i32 : i32, i32
  }
  func.func @transform_1(%arg0: i32) -> (i32, i32) {
    %c0_i32 = arith.constant 0 : i32
    %c0_i32_0 = arith.constant 0 : i32
    %c0_i32_1 = arith.constant 0 : i32
    return %c0_i32, %c0_i32_0 : i32, i32
  }
  func.func @transform_2(%arg0: i32) -> (i32, i32) {
    %c0_i32 = arith.constant 0 : i32
    %c0_i32_0 = arith.constant 0 : i32
    %c0_i32_1 = arith.constant 0 : i32
    return %c0_i32, %c0_i32_0 : i32, i32
  }
  func.func @transform_3(%arg0: i32) -> (i32, i32) {
    %c0_i32 = arith.constant 0 : i32
    %c0_i32_0 = arith.constant 0 : i32
    %c0_i32_1 = arith.constant 0 : i32
    return %c0_i32, %c0_i32_0 : i32, i32
  }
  func.func @transform_4(%arg0: i32) -> (i32, i32) {
    %c0_i32 = arith.constant 0 : i32
    %c0_i32_0 = arith.constant 0 : i32
    %c0_i32_1 = arith.constant 0 : i32
    return %c0_i32, %c0_i32_0 : i32, i32
  }
  func.func @transform_5(%arg0: i32) -> (i32, i32) {
    %c0_i32 = arith.constant 0 : i32
    %c0_i32_0 = arith.constant 0 : i32
    return %arg0, %c0_i32 : i32, i32
  }
}

</mosaic_0001>

<bundles_post_ra>
// kernel: resmlp_forward.1
= control target key start
LH: loop header
LB: loop body
LE: loop exit
PB: predicated region body
PF: predicated region fallthrough
CT: control target
= control target key end

     0   :  { %10 = vsyncpa [#allocation3], 0  ;;  %s560_s0 = inlined_call_operand.vmem [shape: f32[8,128], index: 0, kind: input, shape index: {}]   ;;  %s561_s1 = inlined_call_operand.hbm [shape: f32[128,256], index: 1, kind: input, shape index: {}]   ;;  %s562_s2 = inlined_call_operand.vmem [shape: f32[1,128], index: 2, kind: input, shape index: {}]   ;;  %s563_s3 = inlined_call_operand.hbm [shape: f32[128,128], index: 3, kind: input, shape index: {}]   ;;  %s564_s4 = inlined_call_operand.vmem [shape: f32[1,128], index: 4, kind: input, shape index: {}]   ;;  %s565_s5 = inlined_call_operand.hbm [shape: f32[8,128], index: 5, kind: output, shape index: {}]  }
   0x1   :  { %11 = vsyncpa [#allocation6], 0 }
   0x2   :  { %12 = vsyncpa [#allocation4], 0  ;;  %s465_s18 = smov [#allocation2]   ;;  %s393_s22 = scalar_lea.hbm %s561_s1, 4096 }
   0x3   :  { %s20_s19 = sshll.u32 %s465_s18, 4  ;;  %p394_p0 = scmp.ne.s32.totalorder %s561_s1, %s393_s22  ;;  %s21_s19 = int_to_ptr.vmem [resolvable:$true] %s20_s19 }
   0x4   :  { %p397_p1 = scmp.lt.u32.totalorder %s393_s22, %s561_s1 }
   0x6   :  { %p399_p2 = pnand %p397_p1, %p394_p0 }
   0x8   :  { %402 = shalt.err (!%p399_p2)
}
   0x9   :  { %s403_s27 = scalar_lea.vmem %s21_s19, 4096  ;;  %p408_p4 = scmp.lt.s32.totalorder %s21_s19, %s21_s19 }
   0xa   :  { %p404_p3 = scmp.ne.s32.totalorder %s21_s19, %s403_s27  ;;  %p409_p5 = scmp.lt.s32.totalorder %s403_s27, %s403_s27 }
   0xc   :  { %p410_p6 = por %p409_p5, %p408_p4 }
   0xe   :  { %p411_p7 = pnand %p410_p6, %p404_p3 }
  0x10   :  { %414 = shalt.err (!%p411_p7)
}
  0x11   :  { %s466_s28 = smov 256   ;;  %s467_s29 = smov 16  }
  0x12   :  { %26 = dma.hbm_to_vmem [thread:$0]  %s561_s1, 4096, %s21_s19, [#allocation3], %s466_s28, %s466_s28, %s467_s29  }
  0x13   :  { %s468_s7 = smov [#allocation5]   ;;  %s415_s11 = scalar_lea.hbm %s563_s3, 2048 }
  0x14   :  { %s34_s8 = sshll.u32 %s468_s7, 4  ;;  %p416_p8 = scmp.ne.s32.totalorder %s563_s3, %s415_s11  ;;  %s35_s8 = int_to_ptr.vmem [resolvable:$true] %s34_s8 }
  0x15   :  { %p419_p9 = scmp.lt.u32.totalorder %s415_s11, %s563_s3 }
  0x17   :  { %p421_p10 = pnand %p419_p9, %p416_p8 }
  0x19   :  { %424 = shalt.err (!%p421_p10)
}
  0x1a   :  { %s425_s16 = scalar_lea.vmem %s35_s8, 2048  ;;  %p430_p12 = scmp.lt.s32.totalorder %s35_s8, %s35_s8 }
  0x1b   :  { %p426_p11 = scmp.ne.s32.totalorder %s35_s8, %s425_s16  ;;  %p431_p13 = scmp.lt.s32.totalorder %s425_s16, %s425_s16 }
  0x1d   :  { %p432_p0 = por %p431_p13, %p430_p12 }
  0x1f   :  { %p433_p1 = pnand %p432_p0, %p426_p11 }
  0x21   :  { %436 = shalt.err (!%p433_p1)
}
  0x22   :  { %s469_s1 = smov 128   ;;  %s470_s17 = smov 8  }
  0x23   :  { %40 = dma.hbm_to_vmem [thread:$0]  %s563_s3, 2048, %s35_s8, [#allocation6], %s469_s1, %s469_s1, %s470_s17  }
  0x24   :  { %459 = dma.done.wait [#allocation3], 4096  }
  0x25   :  { %460 = vsyncadd [#allocation3], 4294963200 }
  0x26   :  { %461 = dma.done.wait [#allocation6], 2048  }
  0x27   :  { %462 = vsyncadd [#allocation6], 4294965248  ;;  %v471_v0 = vmov 0.0   ;;  %v472_v1 = vmov 0.0|0.0   ;;  %v51_v2 = vld [vmem:[#allocation2 + $0x8] sm:$0xff]  ;;  %v53_v3 = vld [vmem:[#allocation2 + $0x18] sm:$0xff] }
  0x28   :  { %146 = vmatprep.mubr.f32.mxu0 %v471_v0  ;;  %359 = vmatprep.subr.bf16.mxu1 %v472_v1  ;;  %v50_v4 = vld [vmem:[#allocation2] sm:$0xff]  ;;  %v327_v5 = vpack.c.bf16 %v53_v3, %v51_v2  ;;  %v52_v6 = vld [vmem:[#allocation2 + $0x10] sm:$0xff]  ;;  %v55_v7 = vld [vmem:[#allocation2 + $0x28] sm:$0xff]  ;;  %vm473_vm0 = vmmov 0   ;;  %s474_s24 = smov [#allocation7]  }
  0x29   :  { %v57_v8 = vld [vmem:[#allocation2 + $0x38] sm:$0xff]  ;;  %v329_v9 = vpack.c.bf16 %v52_v6, %v50_v4  ;;  %v54_v11 = vld [vmem:[#allocation2 + $0x20] sm:$0xff]  ;;  %v56_v12 = vld [vmem:[#allocation2 + $0x30] sm:$0xff]  ;;  %324 = vmatprep.mubr.msk.f32.mxu1 %vm473_vm0, %v471_v0  ;;  %s263_s25 = sshll.u32 %s474_s24, 4  ;;  %s264_s25 = int_to_ptr.vmem [resolvable:$true] %s263_s25 }
  0x2a   :  { %v331_v10 = vpack.c.bf16 %v57_v8, %v55_v7  ;;  %v59_v13 = vld [vmem:[#allocation2 + $0x48] sm:$0xff]  ;;  %328 = vmatprep.subr.bf16.mxu0 %v327_v5  ;;  %v61_v14 = vld [vmem:[#allocation2 + $0x58] sm:$0xff]  ;;  %v333_v15 = vpack.c.bf16 %v56_v12, %v54_v11  ;;  %v58_v17 = vld [vmem:[#allocation2 + $0x40] sm:$0xff]  ;;  %s437_s26 = scalar_lea.vmem %s264_s25, 128  ;;  %p442_p3 = scmp.lt.s32.totalorder %s264_s25, %s264_s25 }
  0x2b   :  { %330 = vmatpush1.bf16.msra.mxu0 %v329_v9  ;;  %v335_v16 = vpack.c.bf16 %v61_v14, %v59_v13  ;;  %v60_v18 = vld [vmem:[#allocation2 + $0x50] sm:$0xff]  ;;  %v63_v19 = vld [vmem:[#allocation2 + $0x68] sm:$0xff]  ;;  %v65_v20 = vld [vmem:[#allocation2 + $0x78] sm:$0xff]  ;;  %p438_p2 = scmp.ne.s32.totalorder %s264_s25, %s437_s26  ;;  %p443_p4 = scmp.lt.s32.totalorder %s437_s26, %s437_s26 }
  0x2c   :  { %332 = vmatprep.subr.bf16.mxu0 %v331_v10  ;;  %v337_v21 = vpack.c.bf16 %v60_v18, %v58_v17  ;;  %v339_v22 = vpack.c.bf16 %v65_v20, %v63_v19  ;;  %v62_v23 = vld [vmem:[#allocation2 + $0x60] sm:$0xff]  ;;  %v64_v24 = vld [vmem:[#allocation2 + $0x70] sm:$0xff]  ;;  %v67_v25 = vld [vmem:[#allocation2 + $0x88] sm:$0xff] }
  0x2d   :  { %v69_v26 = vld [vmem:[#allocation2 + $0x98] sm:$0xff]  ;;  %v162_v27 = vld [vmem:[#allocation5] sm:$0xff]  ;;  %v163_v28 = vld [vmem:[#allocation5 + $0x8] sm:$0xff]  ;;  %v341_v30 = vpack.c.bf16 %v64_v24, %v62_v23  ;;  %p444_p5 = por %p443_p4, %p442_p3 }
  0x2e   :  { %v164_v29 = vld [vmem:[#allocation5 + $0x10] sm:$0xff]  ;;  %v360_v31 = vpack.c.bf16 %v163_v28, %v162_v27  ;;  %v165_v32 = vld [vmem:[#allocation5 + $0x18] sm:$0xff]  ;;  %v343_v33 = vpack.c.bf16 %v69_v26, %v67_v25  ;;  %v66_v34 = vld [vmem:[#allocation2 + $0x80] sm:$0xff] }
  0x2f   :  { %334 = vmatpush1.bf16.msra.mxu0 %v333_v15  ;;  %v68_v35 = vld [vmem:[#allocation2 + $0x90] sm:$0xff]  ;;  %v71_v36 = vld [vmem:[#allocation2 + $0xa8] sm:$0xff]  ;;  %v73_v37 = vld [vmem:[#allocation2 + $0xb8] sm:$0xff]  ;;  %v363_v38 = vpack.c.bf16 %v165_v32, %v164_v29  ;;  %p445_p6 = pnand %p444_p5, %p438_p2 }
  0x30   :  { %336 = vmatprep.subr.bf16.mxu0 %v335_v16  ;;  %361 = vmatpush3.bf16.msra.mxu1 %v360_v31  ;;  %v166_v39 = vld [vmem:[#allocation5 + $0x20] sm:$0xff]  ;;  %v167_v40 = vld [vmem:[#allocation5 + $0x28] sm:$0xff]  ;;  %v345_v41 = vpack.c.bf16 %v68_v35, %v66_v34  ;;  %v347_v42 = vpack.c.bf16 %v73_v37, %v71_v36  ;;  %v72_v44 = vld [vmem:[#allocation2 + $0xb0] sm:$0xff] }
  0x31   :  { %362 = vmatprep.subr.bf16.mxu1 %v472_v1  ;;  %v70_v43 = vld [vmem:[#allocation2 + $0xa0] sm:$0xff]  ;;  %v75_v45 = vld [vmem:[#allocation2 + $0xc8] sm:$0xff]  ;;  %v77_v46 = vld [vmem:[#allocation2 + $0xd8] sm:$0xff]  ;;  %v366_v47 = vpack.c.bf16 %v167_v40, %v166_v39 }
  0x32   :  { %v168_v48 = vld [vmem:[#allocation5 + $0x30] sm:$0xff]  ;;  %v169_v49 = vld [vmem:[#allocation5 + $0x38] sm:$0xff]  ;;  %v349_v50 = vpack.c.bf16 %v72_v44, %v70_v43  ;;  %v351_v51 = vpack.c.bf16 %v77_v46, %v75_v45  ;;  %v74_v52 = vld [vmem:[#allocation2 + $0xc0] sm:$0xff] }
  0x33   :  { %338 = vmatpush1.bf16.msra.mxu0 %v337_v21  ;;  %v76_v53 = vld [vmem:[#allocation2 + $0xd0] sm:$0xff]  ;;  %v79_v54 = vld [vmem:[#allocation2 + $0xe8] sm:$0xff]  ;;  %v81_v55 = vld [vmem:[#allocation2 + $0xf8] sm:$0xff]  ;;  %v369_v56 = vpack.c.bf16 %v169_v49, %v168_v48 }
  0x34   :  { %340 = vmatprep.subr.bf16.mxu0 %v339_v22  ;;  %364 = vmatpush3.bf16.msra.mxu1 %v363_v38  ;;  %v170_v57 = vld [vmem:[#allocation5 + $0x40] sm:$0xff]  ;;  %v171_v58 = vld [vmem:[#allocation5 + $0x48] sm:$0xff]  ;;  %v353_v59 = vpack.c.bf16 %v76_v53, %v74_v52  ;;  %v355_v60 = vpack.c.bf16 %v81_v55, %v79_v54  ;;  %v80_v62 = vld [vmem:[#allocation2 + $0xf0] sm:$0xff] }
  0x35   :  { %365 = vmatprep.subr.bf16.mxu1 %v472_v1  ;;  %v78_v61 = vld [vmem:[#allocation2 + $0xe0] sm:$0xff]  ;;  %v372_v63 = vpack.c.bf16 %v171_v58, %v170_v57  ;;  %v172_v2 = vld [vmem:[#allocation5 + $0x50] sm:$0xff]  ;;  %v173_v3 = vld [vmem:[#allocation5 + $0x58] sm:$0xff] }
  0x36   :  { %v357_v4 = vpack.c.bf16 %v80_v62, %v78_v61  ;;  %v375_v5 = vpack.c.bf16 %v173_v3, %v172_v2  ;;  %v174_v6 = vld [vmem:[#allocation5 + $0x60] sm:$0xff]  ;;  %v175_v7 = vld [vmem:[#allocation5 + $0x68] sm:$0xff]  ;;  %v176_v10 = vld [vmem:[#allocation5 + $0x70] sm:$0xff] }
  0x37   :  { %342 = vmatpush1.bf16.msra.mxu0 %v341_v30  ;;  %v49_v8 = vld [vmem:[%s560_s0] sm:$0xff]  ;;  %v378_v9 = vpack.c.bf16 %v175_v7, %v174_v6  ;;  %v177_v11 = vld [vmem:[#allocation5 + $0x78] sm:$0xff] }
  0x38   :  { %344 = vmatprep.subr.bf16.mxu0 %v343_v33  ;;  %367 = vmatpush3.bf16.msra.mxu1 %v366_v47  ;;  %v381_v12 = vpack.c.bf16 %v177_v11, %v176_v10  ;;  %v273_v13 = vld [vmem:[%s562_s2] ss:$0 sm:$0xff] }
  0x39   :  { %368 = vmatprep.subr.bf16.mxu1 %v472_v1 }
  0x3b   :  { %346 = vmatpush1.bf16.msra.mxu0 %v345_v41 }
  0x3c   :  { %348 = vmatprep.subr.bf16.mxu0 %v347_v42  ;;  %370 = vmatpush3.bf16.msra.mxu1 %v369_v56 }
  0x3d   :  { %371 = vmatprep.subr.bf16.mxu1 %v472_v1 }
  0x3f   :  { %350 = vmatpush1.bf16.msra.mxu0 %v349_v50 }
  0x40   :  { %352 = vmatprep.subr.bf16.mxu0 %v351_v51  ;;  %373 = vmatpush3.bf16.msra.mxu1 %v372_v63 }
  0x41   :  { %374 = vmatprep.subr.bf16.mxu1 %v472_v1 }
  0x43   :  { %354 = vmatpush1.bf16.msra.mxu0 %v353_v59 }
  0x44   :  { %356 = vmatprep.subr.bf16.mxu0 %v355_v60  ;;  %376 = vmatpush3.bf16.msra.mxu1 %v375_v5 }
  0x45   :  { %377 = vmatprep.subr.bf16.mxu1 %v472_v1 }
  0x47   :  { %358 = vmatpush1.bf16.msra.mxu0 %v357_v4 }
  0x48   :  { %379 = vmatpush3.bf16.msra.mxu1 %v378_v9 }
  0x49   :  { %380 = vmatprep.subr.bf16.mxu1 %v472_v1  ;;  %v274_v1 = vld [vmem:[%s564_s4] ss:$0 sm:$0xff] }
  0x4a   :  { %147 = vmatmul.mubr.f32.vlgmr.msra.gmra.mrb[0].mxu0 %v49_v8 }
  0x4c   :  { %382 = vmatpush3.bf16.msra.mxu1 %v381_v12 }
 0x11d   :  { %v148_v14 = vpop.f32.mrb[0].mxu0 }
 0x11e   :  { %v160_v15 = vadd.f32 %v273_v13, %v148_v14  ;;  %v150_v16 = vpop.f32.mrb[1].mxu0 }
 0x120   :  { %v161_v17 = vmax.f32 %v160_v15, 0.0 }
 0x122   :  { %325 = vmatmul.mubr.f32.vlgmr.msra.gmra.mrb[0].mxu1 %v161_v17 }
 0x1f5   :  { %v244_v18 = vpop.f32.mrb[0].mxu1 }
 0x1f6   :  { %v245_v19 = vadd.f32 %v244_v18, %v150_v16  ;;  %v326_v20 = vpop.f32.mrb[1].mxu1 }
 0x1f8   :  { %v255_v21 = vadd.f32 %v274_v1, %v245_v19 }
 0x1fa   :  { %256 = vst [vmem:[#allocation7] sm:$0xff] %v255_v21 }
 0x1fb   :  { %448 = shalt.err (!%p445_p6)
}
 0x1fc   :  { %s449_s28 = scalar_lea.hbm %s565_s5, 128 }
 0x1fd   :  { %p450_p7 = scmp.ne.s32.totalorder %s565_s5, %s449_s28  ;;  %p453_p8 = scmp.lt.u32.totalorder %s449_s28, %s565_s5 }
 0x1ff   :  { %p455_p9 = pnand %p453_p8, %p450_p7 }
 0x201   :  { %458 = shalt.err (!%p455_p9)
}
 0x202   :  { %266 = dma.vmem_to_hbm [thread:$0]  %s264_s25, 128, %s565_s5, [#allocation4]  }
 0x203   :  { %463 = dma.done.wait [#allocation4], 128  }
 0x204   :  { %464 = vsyncadd [#allocation4], 4294967168 }
 0x205   :  { %270 = vsyncpa [#allocation3], 1 }
 0x206   :  { %271 = vsyncpa [#allocation6], 1 }
 0x207   :  { %272 = vsyncpa [#allocation4], 1 }

</bundles_post_ra>
